<compile_context>
chip_gen: v7x
topology: tpu7x:2x2x1
jax: 0.10.0
libtpu: 0.0.40
codegen_flags: <defaults>
</compile_context>

<pallas_src>
import jax
import jax.numpy as jnp
from jax.experimental import pallas as pl
from jax.experimental.pallas import tpu as pltpu

C_IN = 3
C_MID = 32
NUM_CLASSES = 80
C_OUT = NUM_CLASSES * 3          # 240
K_RAW = 9 * C_IN                 # 27 (3x3 taps * 3 channels)
K_PAD = 32                       # contraction dim padded for the MXU


def _yolo_kernel(x_ref, w1t_ref, w2t_ref, b2_ref, o_ref):
    # x_ref:   (1, K_PAD, TQ)  bf16 K-major im2col patches (row 27 == 1.0)
    # w1t_ref: (C_MID, K_PAD)  bf16 (column 27 holds b1, 28..31 are zero)
    # w2t_ref: (C_OUT, C_MID)  bf16 1x1 head conv weights
    # b2_ref:  (C_OUT, 1)      f32
    # o_ref:   (1, C_OUT, TQ)  lane-dense NCHW-layout output slab
    h = jnp.dot(w1t_ref[...], x_ref[0], preferred_element_type=jnp.float32)
    h = jnp.maximum(h, 0.0)                                   # ReLU in f32
    out = jnp.dot(w2t_ref[...], h.astype(w2t_ref.dtype),
                  preferred_element_type=jnp.float32) + b2_ref[...]
    o_ref[0] = out.astype(o_ref.dtype)


def _round_up(x, m):
    return -(-x // m) * m


def yolov3_forward(x_nchw, w1, b1, w2, b2, *, tq_max=4096,
                   mxu_dtype=jnp.bfloat16, out_dtype=jnp.float32):
    """x_nchw: (N, 3, H, W) float32. Returns (N, C_OUT, H, W) out_dtype."""
    N, Cin, H, W = x_nchw.shape
    assert Cin == C_IN
    HW = H * W

    # --- row-tile sizing ------------------------------------------------
    # Lane dim of the output block is TQ -> must be a multiple of 128.
    tq_max = max(128, (tq_max // 128) * 128)
    n_tiles = pl.cdiv(HW, tq_max)
    if N == 1:
        n_tiles = max(n_tiles, 2)        # keep both v7x TensorCores busy
    tq = _round_up(pl.cdiv(HW, n_tiles), 128)
    hw_pad = n_tiles * tq

    # --- im2col in the wrapper, K-major: (N, K_PAD, HW_pad) --------------
    x_pad = jnp.pad(x_nchw, ((0, 0), (0, 0), (1, 1), (1, 1)))
    taps = [x_pad[:, :, kh:kh + H, kw:kw + W]
            for kh in range(3) for kw in range(3)]            # 9 x (N,3,H,W)
    patches = jnp.stack(taps, axis=1).reshape(N, K_RAW, HW)   # row = tap*3+cin
    ones = jnp.ones((N, 1, HW), patches.dtype)                # bias-fold row 27
    zeros = jnp.zeros((N, K_PAD - K_RAW - 1, HW), patches.dtype)
    patches = jnp.concatenate([patches, ones, zeros], axis=1)
    if hw_pad != HW:
        patches = jnp.pad(patches, ((0, 0), (0, 0), (0, hw_pad - HW)))
    patches = patches.astype(mxu_dtype)
    # TODO(synk): second-tier opt — fuse im2col into the kernel via halo
    # row-tiles + sublane shifts to drop the patch-tensor HBM round trip.

    # --- weights: PyTorch layouts -> weight-stationary matrices ----------
    # conv1 (Cout, Cin, kh, kw) -> (Cout, kh, kw, Cin) -> (32, 27); col 27 = b1.
    w1t = jnp.transpose(w1, (0, 2, 3, 1)).reshape(C_MID, K_RAW)
    w1t = jnp.concatenate(
        [w1t, b1.reshape(C_MID, 1),
         jnp.zeros((C_MID, K_PAD - K_RAW - 1), w1t.dtype)], axis=1)
    w1t = w1t.astype(mxu_dtype)
    # head 1x1: (Cout, Cin, 1, 1) -> (Cout, Cin)
    w2t = w2.reshape(C_OUT, C_MID).astype(mxu_dtype)
    b2_col = b2.reshape(C_OUT, 1).astype(jnp.float32)

    grid = (N, n_tiles)
    out_flat = pl.pallas_call(
        _yolo_kernel,
        out_shape=jax.ShapeDtypeStruct((N, C_OUT, hw_pad), out_dtype),
        grid_spec=pltpu.PrefetchScalarGridSpec(
            num_scalar_prefetch=0,
            grid=grid,
            in_specs=[
                pl.BlockSpec((1, K_PAD, tq), lambda n, q: (n, 0, q)),
                pl.BlockSpec((C_MID, K_PAD), lambda n, q: (0, 0)),
                pl.BlockSpec((C_OUT, C_MID), lambda n, q: (0, 0)),
                pl.BlockSpec((C_OUT, 1), lambda n, q: (0, 0)),
            ],
            out_specs=pl.BlockSpec((1, C_OUT, tq), lambda n, q: (n, 0, q)),
        ),
        compiler_params=pltpu.CompilerParams(
            dimension_semantics=("parallel", "parallel")),
    )(patches, w1t, w2t, b2_col)

    # Output is already channel-major (NCHW): just drop hw padding + reshape.
    return out_flat[:, :, :HW].reshape(N, C_OUT, H, W)


def _reference_bf16(x_nchw, w1, b1, w2, b2):
    """Pure-JAX reference mirroring the kernel's bf16 MXU operands
    (b1 is folded into the bf16 conv1 contraction in the kernel)."""
    def q(a):
        return a.astype(jnp.bfloat16).astype(jnp.float32)
    x_nhwc = q(jnp.transpose(x_nchw, (0, 2, 3, 1)))
    w1_hwio = q(jnp.transpose(w1, (2, 3, 1, 0)))
    h = jax.lax.conv_general_dilated(
        x_nhwc, w1_hwio, (1, 1), "SAME",
        dimension_numbers=("NHWC", "HWIO", "NHWC"),
        preferred_element_type=jnp.float32)
    h = jnp.maximum(h + q(b1).reshape(1, 1, 1, -1), 0.0)
    w2_hwio = q(jnp.transpose(w2, (2, 3, 1, 0)))
    o = jax.lax.conv_general_dilated(
        q(h), w2_hwio, (1, 1), "VALID",
        dimension_numbers=("NHWC", "HWIO", "NHWC"),
        preferred_element_type=jnp.float32)
    o = o + b2.reshape(1, 1, 1, -1)
    return jnp.transpose(o, (0, 3, 1, 2))


def _reference_f32(x_nchw, w1, b1, w2, b2):
    """Full-precision reference (loose sanity check only)."""
    x_nhwc = jnp.transpose(x_nchw, (0, 2, 3, 1))
    w1_hwio = jnp.transpose(w1, (2, 3, 1, 0))
    h = jax.lax.conv_general_dilated(
        x_nhwc, w1_hwio, (1, 1), "SAME",
        dimension_numbers=("NHWC", "HWIO", "NHWC"))
    h = jnp.maximum(h + b1.reshape(1, 1, 1, -1), 0.0)
    w2_hwio = jnp.transpose(w2, (2, 3, 1, 0))
    o = jax.lax.conv_general_dilated(
        h, w2_hwio, (1, 1), "VALID",
        dimension_numbers=("NHWC", "HWIO", "NHWC"))
    o = o + b2.reshape(1, 1, 1, -1)
    return jnp.transpose(o, (0, 3, 1, 2))


if __name__ == "__main__":
    key = jax.random.PRNGKey(0)
    k_x, k_w1, k_b1, k_w2, k_b2 = jax.random.split(key, 5)

    N, H, W = 2, 16, 16
    x = jax.random.normal(k_x, (N, C_IN, H, W), dtype=jnp.float32)

    # Deterministic parameter init (shapes match nn.Conv2d in the module).
    w1 = jax.random.normal(k_w1, (C_MID, C_IN, 3, 3), dtype=jnp.float32) * 0.1
    b1 = jax.random.normal(k_b1, (C_MID,), dtype=jnp.float32) * 0.1
    w2 = jax.random.normal(k_w2, (C_OUT, C_MID, 1, 1), dtype=jnp.float32) * 0.1
    b2 = jax.random.normal(k_b2, (C_OUT,), dtype=jnp.float32) * 0.1

    out = jax.block_until_ready(yolov3_forward(x, w1, b1, w2, b2))
    assert out.shape == (N, C_OUT, H, W), out.shape

    # Tight check vs. a reference using the same bf16-rounded MXU operands.
    ref_bf16 = jax.block_until_ready(_reference_bf16(x, w1, b1, w2, b2))
    assert jnp.allclose(out, ref_bf16, atol=2e-3, rtol=2e-3), \
        float(jnp.max(jnp.abs(out - ref_bf16)))

    # Loose sanity check vs. the full-f32 reference (bf16 quantization noise).
    ref_f32 = jax.block_until_ready(_reference_f32(x, w1, b1, w2, b2))
    assert jnp.allclose(out, ref_f32, atol=5e-2, rtol=5e-2), \
        float(jnp.max(jnp.abs(out - ref_f32)))

    print("KERNEL_OK")
</pallas_src>

<mosaic_0001>
module attributes {stable_mosaic.version = 11 : i64} {
  func.func @_yolo_kernel(%arg0: i32, %arg1: i32, %arg2: memref<1x32x256xbf16, #tpu.memory_space<vmem>>, %arg3: memref<32x32xbf16, #tpu.memory_space<vmem>>, %arg4: memref<240x32xbf16, #tpu.memory_space<vmem>>, %arg5: memref<240x1xf32, #tpu.memory_space<vmem>>, %arg6: memref<1x240x256xf32, #tpu.memory_space<vmem>>) attributes {dimension_semantics = [#tpu.dimension_semantics<parallel>, #tpu.dimension_semantics<parallel>], iteration_bounds = array<i64: 2, 1>, scalar_prefetch = 0 : i64, scratch_operands = 0 : i64, tpu.core_type = #tpu.core_type<tc>, window_params = [{transform_indices = @transform_0, window_bounds = array<i64: 1, 32, 256>}, {pipeline_mode = #tpu.pipeline_mode<synchronous>, transform_indices = @transform_1, window_bounds = array<i64: 32, 32>}, {pipeline_mode = #tpu.pipeline_mode<synchronous>, transform_indices = @transform_2, window_bounds = array<i64: 240, 32>}, {pipeline_mode = #tpu.pipeline_mode<synchronous>, transform_indices = @transform_3, window_bounds = array<i64: 240, 1>}, {transform_indices = @transform_4, window_bounds = array<i64: 1, 240, 256>}]} {
    %c0 = arith.constant 0 : index
    %c0_0 = arith.constant 0 : index
    %0 = vector.load %arg3[%c0, %c0_0] : memref<32x32xbf16, #tpu.memory_space<vmem>>, vector<32x32xbf16>
    %c0_1 = arith.constant 0 : index
    %c0_2 = arith.constant 0 : index
    %c0_3 = arith.constant 0 : index
    %1 = vector.load %arg2[%c0_1, %c0_2, %c0_3] : memref<1x32x256xbf16, #tpu.memory_space<vmem>>, vector<1x32x256xbf16>
    %2 = vector.shape_cast %1 : vector<1x32x256xbf16> to vector<32x256xbf16>
    %cst = arith.constant dense<0.000000e+00> : vector<32x256xf32>
    %3 = tpu.matmul %0, %2, %cst {dimension_numbers = #tpu.dot_dimension_numbers<[1], [0], [0], [1], [0, 0, 1, 1], [], []>} : vector<32x32xbf16>, vector<32x256xbf16>, vector<32x256xf32> -> vector<32x256xf32>
    %cst_4 = arith.constant 0.000000e+00 : f32
    %4 = vector.broadcast %cst_4 : f32 to vector<32x256xf32>
    %5 = arith.maximumf %3, %4 : vector<32x256xf32>
    %c0_5 = arith.constant 0 : index
    %c0_6 = arith.constant 0 : index
    %6 = vector.load %arg4[%c0_5, %c0_6] : memref<240x32xbf16, #tpu.memory_space<vmem>>, vector<240x32xbf16>
    %7 = arith.truncf %5 : vector<32x256xf32> to vector<32x256xbf16>
    %cst_7 = arith.constant dense<0.000000e+00> : vector<240x256xf32>
    %8 = tpu.matmul %6, %7, %cst_7 {dimension_numbers = #tpu.dot_dimension_numbers<[1], [0], [0], [1], [0, 0, 1, 1], [], []>} : vector<240x32xbf16>, vector<32x256xbf16>, vector<240x256xf32> -> vector<240x256xf32>
    %c0_8 = arith.constant 0 : index
    %c0_9 = arith.constant 0 : index
    %9 = vector.load %arg5[%c0_8, %c0_9] : memref<240x1xf32, #tpu.memory_space<vmem>>, vector<240x1xf32>
    %10 = vector.broadcast %9 : vector<240x1xf32> to vector<240x256xf32>
    %11 = arith.addf %8, %10 : vector<240x256xf32>
    %c0_10 = arith.constant 0 : index
    %c0_11 = arith.constant 0 : index
    %c0_12 = arith.constant 0 : index
    %12 = vector.load %arg6[%c0_10, %c0_11, %c0_12] : memref<1x240x256xf32, #tpu.memory_space<vmem>>, vector<1x240x256xf32>
    %13 = vector.shape_cast %12 : vector<1x240x256xf32> to vector<240x256xf32>
    %14 = vector.shape_cast %11 : vector<240x256xf32> to vector<1x240x256xf32>
    tpu.vector_store %arg6[%c0_10, %c0_11, %c0_12], %14 {strides = array<i32>} : memref<1x240x256xf32, #tpu.memory_space<vmem>>, vector<1x240x256xf32>,
    return
  }
  func.func @transform_0(%arg0: i32, %arg1: i32) -> (i32, i32, i32) {
    %c0_i32 = arith.constant 0 : i32
    %c0_i32_0 = arith.constant 0 : i32
    return %arg0, %c0_i32, %arg1 : i32, i32, i32
  }
  func.func @transform_1(%arg0: i32, %arg1: i32) -> (i32, i32) {
    %c0_i32 = arith.constant 0 : i32
    %c0_i32_0 = arith.constant 0 : i32
    %c0_i32_1 = arith.constant 0 : i32
    return %c0_i32, %c0_i32_0 : i32, i32
  }
  func.func @transform_2(%arg0: i32, %arg1: i32) -> (i32, i32) {
    %c0_i32 = arith.constant 0 : i32
    %c0_i32_0 = arith.constant 0 : i32
    %c0_i32_1 = arith.constant 0 : i32
    return %c0_i32, %c0_i32_0 : i32, i32
  }
  func.func @transform_3(%arg0: i32, %arg1: i32) -> (i32, i32) {
    %c0_i32 = arith.constant 0 : i32
    %c0_i32_0 = arith.constant 0 : i32
    %c0_i32_1 = arith.constant 0 : i32
    return %c0_i32, %c0_i32_0 : i32, i32
  }
  func.func @transform_4(%arg0: i32, %arg1: i32) -> (i32, i32, i32) {
    %c0_i32 = arith.constant 0 : i32
    %c0_i32_0 = arith.constant 0 : i32
    return %arg0, %c0_i32, %arg1 : i32, i32, i32
  }
}

</mosaic_0001>

<bundles_post_ra>
// kernel: tpu_custom_call.1
= control target key start
LH: loop header
LB: loop body
LE: loop exit
PB: predicated region body
PF: predicated region fallthrough
CT: control target
= control target key end

     0   :  { %9 = vsyncpa [#allocation3], 0  ;;  %s1644_s0 = inlined_call_operand.vmem [shape: bf16[2,32,256], index: 0, kind: input, shape index: {}]   ;;  %s1645_s1 = inlined_call_operand.vmem [shape: bf16[32,32], index: 1, kind: input, shape index: {}]   ;;  %s1646_s2 = inlined_call_operand.vmem [shape: bf16[240,32], index: 2, kind: input, shape index: {}]   ;;  %s1647_s3 = inlined_call_operand.vmem [shape: f32[240,1], index: 3, kind: input, shape index: {}]   ;;  %s1648_s4 = inlined_call_operand.hbm [shape: f32[2,240,256], index: 4, kind: output, shape index: {}]  }
   0x1   :  { %11 = vsyncpa [#allocation3 + $0x1], 0  ;;  %s1253_s15 = smov 0   ;;  %s1255_s16 = smov 0  }
   0x2   :  { %s1257_s17 = smov 0   ;;  %s1259_s18 = smov 0  }
   0x3   :  { %s1261_s19 = smov 0   ;;  %s1263_s20 = smov 0  }
   0x4 LB: > { %s1006_s21 = sadd.s32 4294967295, %s1222_s20   ;;  %s1007_s22 = sadd.s32 4294967294, %s1222_s20   ;;  %s1222_s20 = sphi %s1263_s20, %s17_s20   ;;  %s1218_s19 = sphi %s1261_s19, %s1655_s19   ;;  %s1214_s18 = sphi %s1259_s18, %s1654_s18   ;;  %s1210_s17 = sphi %s1257_s17, %s1653_s17   ;;  %s1206_s16 = sphi %s1255_s16, %s1652_s16   ;;  %s1202_s15 = sphi %s1253_s15, %s1651_s15  }
   0x5   : > { %s29_s23 = sadd.s32 1, %s1218_s19  ;;  %s129_s24 = sadd.s32 1, %s1210_s17 }
   0x6   : > { %p31_p0 = scmp.ge.s32.totalorder %s29_s23, 2  ;;  %p139_p1 = scmp.ne.s32.totalorder %s1210_s17, %s1206_s16 }
   0x7   : > { %p140_p2 = scmp.eq.s32.totalorder %s1006_s21, 1  ;;  %p145_p3 = scmp.ne.s32.totalorder %s1206_s16, %s1202_s15 }
   0x8   : > { %s1657_s23 = smov (%p31_p0, %s29_s23), 0  ;;  %p146_p5 = scmp.eq.s32.totalorder %s1007_s22, 1 }
   0x9   : > { %p1293_p4 = por %p140_p2, %p139_p1  ;;  %s124_s26 = ssub.s32 %s1218_s19, %s1657_s23 }
   0xa   : > { %p1010_p6 = scmp.ge.s32.totalorder %s1222_s20, 1  ;;  %p127_p7 = scmp.eq.s32.totalorder %s124_s26, 0 }
   0xb   : > { %p1300_p8 = por %p146_p5, %p145_p3  ;;  %p186_p9 = scmp.lt.s32.totalorder %s1222_s20, 3 }
   0xc   : > { %s1306_s28 = scalar_select %p127_p7, %s1210_s17, %s129_s24  }
   0xd   : > { %p187_p10 = pnand %p1010_p6, %p186_p9 }
   0xe   : > { %p217_p11 = scmp.lt.s32.totalorder (!%p187_p10), %s1214_s18, 1  ;;  %v1224_v0 = vmov (!%p187_p10), 0   ;;  %vm266_vm0 = vcmask (!%p187_p10), 261120   ;;  %v1127_v5 = vld [vmem:[%s1645_s1] sm:$0xff] (!%p187_p10)   ;;  %v1128_v6 = vld [vmem:[%s1645_s1 + $0x8] sm:$0xff] (!%p187_p10)   ;;  %v370_v7 = vld [vmem:[%s1647_s3 + $0x10] sm:$0xff] (!%p187_p10) }
   0xf   : > { %190 = sbr.rel (%p187_p10) target bundleno = 562 (0x232), region = 36  ;;  %305 = vmatprep.mubr.bf16.mxu0 (!%p187_p10), %v1224_v0  ;;  %760 = vmatprep.mubr.bf16.mxu1 (!%p187_p10), %v1224_v0  ;;  %v368_v8 = vld [vmem:[%s1647_s3] sm:$0xff] (!%p187_p10)  ;;  %v371_v9 = vld [vmem:[%s1647_s3 + $0x18] sm:$0xff] (!%p187_p10)  ;;  %v369_v10 = vld [vmem:[%s1647_s3 + $0x8] sm:$0xff] (!%p187_p10)  ;;  %s213_s6 = sand.u32 (!%p187_p10), 1, %s1206_s16  }
  0x10   : > { %1120 = vset.pattern.permute.xlu1 (!%p187_p10), %v1224_v0  ;;  %1119 = vset.pattern.permute.xlu0 (!%p187_p10), %v1224_v0  ;;  %v373_v11 = vld [vmem:[%s1647_s3 + $0x28] sm:$0xff] (!%p187_p10)  ;;  %v372_v12 = vld [vmem:[%s1647_s3 + $0x20] sm:$0xff] (!%p187_p10)  ;;  %v375_v13 = vld [vmem:[%s1647_s3 + $0x38] sm:$0xff] (!%p187_p10)  ;;  %s1060_s9 = smul.u32 (!%p187_p10), 7680, %s1214_s18  ;;  %s1225_s21 = smov (!%p187_p10), [#allocation2]  }
  0x11   : > { %410 = vperm.xlu1 (!%p187_p10), %1120, %v370_v7   ;;  %400 = vperm.xlu0 (!%p187_p10), %1119, %v368_v8   ;;  %v374_v14 = vld [vmem:[%s1647_s3 + $0x30] sm:$0xff] (!%p187_p10)  ;;  %v377_v15 = vld [vmem:[%s1647_s3 + $0x48] sm:$0xff] (!%p187_p10)  ;;  %v376_v16 = vld [vmem:[%s1647_s3 + $0x40] sm:$0xff] (!%p187_p10)  ;;  %s1148_s22 = sshll.u32 (!%p187_p10), %s1225_s21, 4  ;;  %s1149_s22 = int_to_ptr.vmem [resolvable:$false] %s1148_s22 }
  0x12   : > { %v379_v17 = vld [vmem:[%s1647_s3 + $0x58] sm:$0xff] (!%p187_p10)  ;;  %v378_v18 = vld [vmem:[%s1647_s3 + $0x50] sm:$0xff] (!%p187_p10)  ;;  %v381_v19 = vld [vmem:[%s1647_s3 + $0x68] sm:$0xff] (!%p187_p10)  ;;  %s1589_s13 = scalar_lea.hbm (!%p187_p10), %s1648_s4, %s1060_s9  ;;  %s1150_s24 = scalar_lea.vmem (!%p187_p10), %s1149_s22, 15360 }
  0x13   : > { %v380_v20 = vld [vmem:[%s1647_s3 + $0x60] sm:$0xff] (!%p187_p10)  ;;  %v383_v21 = vld [vmem:[%s1647_s3 + $0x78] sm:$0xff] (!%p187_p10)  ;;  %v382_v22 = vld [vmem:[%s1647_s3 + $0x70] sm:$0xff] (!%p187_p10) }
  0x14   : > { %v385_v23 = vld [vmem:[%s1647_s3 + $0x88] sm:$0xff] (!%p187_p10)  ;;  %v384_v24 = vld [vmem:[%s1647_s3 + $0x80] sm:$0xff] (!%p187_p10)  ;;  %v387_v25 = vld [vmem:[%s1647_s3 + $0x98] sm:$0xff] (!%p187_p10) }
  0x15   : > { %415 = vperm.xlu1 (!%p187_p10), %1120, %v371_v9   ;;  %405 = vperm.xlu0 (!%p187_p10), %1119, %v369_v10   ;;  %v386_v26 = vld [vmem:[%s1647_s3 + $0x90] sm:$0xff] (!%p187_p10)  ;;  %v389_v27 = vld [vmem:[%s1647_s3 + $0xa8] sm:$0xff] (!%p187_p10)  ;;  %v388_v28 = vld [vmem:[%s1647_s3 + $0xa0] sm:$0xff] (!%p187_p10) }
  0x16   : > { %s218_s29 = scalar_select %p217_p11, %s1214_s18, 1  ;;  %v391_v29 = vld [vmem:[%s1647_s3 + $0xb8] sm:$0xff]  ;;  %v390_v30 = vld [vmem:[%s1647_s3 + $0xb0] sm:$0xff]  ;;  %v393_v31 = vld [vmem:[%s1647_s3 + $0xc8] sm:$0xff] }
  0x17   : > { %v392_v32 = vld [vmem:[%s1647_s3 + $0xc0] sm:$0xff]  ;;  %v395_v33 = vld [vmem:[%s1647_s3 + $0xd8] sm:$0xff]  ;;  %v394_v34 = vld [vmem:[%s1647_s3 + $0xd0] sm:$0xff]  ;;  %s1598_s18 = scalar_lea.sflag [#allocation3], %s213_s6 }
  0x18   : > { %s1054_s30 = sshll.u32 %s218_s29, 5  ;;  %v397_v35 = vld [vmem:[%s1647_s3 + $0xe8] sm:$0xff]  ;;  %v396_v36 = vld [vmem:[%s1647_s3 + $0xe0] sm:$0xff]  ;;  %v1130_v58 = vld [vmem:[%s1646_s2 + $0x30] sm:$0xff]  }
  0x19   : > { %s224_s7 = scalar_lea.vmem %s1644_s0, %s1054_s30  ;;  %425 = vperm.xlu1 %1120, %v373_v11   ;;  %420 = vperm.xlu0 %1119, %v372_v12   ;;  %v1129_v57 = vld [vmem:[%s1646_s2] sm:$0xff]   ;;  %v1131_v59 = vld [vmem:[%s1646_s2 + $0x8] sm:$0xff]   ;;  %v1132_v60 = vld [vmem:[%s1646_s2 + $0x38] sm:$0xff]  }
  0x1a   : > { %v1121_v1 = vld [vmem:[%s224_s7 + $0x4] ss:$8 sps:$4 sm:$0xff]   ;;  %v1123_v2 = vld [vmem:[%s224_s7] ss:$8 sps:$4 sm:$0xff]   ;;  %v1124_v3 = vld [vmem:[%s224_s7 + $0x14] ss:$8 sps:$4 sm:$0xff]  }
  0x1b   : > { %273 = vmatprep.subr.bf16.mxu0 %v1121_v1  ;;  %v1126_v4 = vld [vmem:[%s224_s7 + $0x10] ss:$8 sps:$4 sm:$0xff]   ;;  %v1134_v62 = vld [vmem:[%s1646_s2 + $0x40] sm:$0xff]   ;;  %v1136_v1 = vld [vmem:[%s1646_s2 + $0x48] sm:$0xff]   ;;  %s1059_s7 = smul.u32 480, %s213_s6 }
  0x1c   : > { %274 = vmatpush1.bf16.msra.mxu0 %v1123_v2  ;;  %v1133_v61 = vld [vmem:[%s1646_s2 + $0x10] sm:$0xff]   ;;  %v1135_v63 = vld [vmem:[%s1646_s2 + $0x18] sm:$0xff]   ;;  %v1137_v2 = vld [vmem:[%s1646_s2 + $0x20] sm:$0xff]  }
  0x1d   : > { %275 = vmatprep.subr.bf16.mxu0 %v1124_v3  ;;  %435 = vperm.xlu1 %1120, %v375_v13   ;;  %v1138_v3 = vld [vmem:[%s1646_s2 + $0x50] sm:$0xff]   ;;  %v1142_v7 = vld [vmem:[%s1646_s2 + $0x68] sm:$0xff]   ;;  %s1509_s8 = scalar_lea.vmem [#allocation2], %s1059_s7 }
  0x1e   : > { %430 = vperm.xlu0 %1119, %v374_v14   ;;  %v1143_v8 = vld [vmem:[%s1646_s2 + $0x70] sm:$0xff]   ;;  %s927_s10 = sshll.u32 %s1509_s8, 4  ;;  %s1591_s10 = int_to_ptr.vmem [resolvable:$true] %s927_s10 }
  0x1f   : > { %s1144_s14 = scalar_lea.vmem %s1591_s10, 7680  ;;  %p1151_p1 = scmp.lt.s32.totalorder %s1591_s10, %s1149_s22 }
  0x20   : > { %276 = vmatpush1.bf16.msra.mxu0 %v1126_v4  ;;  %v1139_v4 = vld [vmem:[%s1646_s2 + $0x28] sm:$0xff]   ;;  %p1145_p12 = scmp.ne.s32.totalorder %s1591_s10, %s1144_s14  ;;  %p1152_p2 = scmp.lt.s32.totalorder %s1150_s24, %s1144_s14 }
  0x21   : > { %445 = vperm.xlu1 %1120, %v377_v15  }
  0x22   : > { %440 = vperm.xlu0 %1119, %v376_v16   ;;  %p1146_p13 = pnand %p1145_p12, %p1293_p4  ;;  %p1153_p3 = por %p1152_p2, %p1151_p1 }
  0x23   : > { %1019 = vmatmul.mubr.msk.bf16.vlgmr.msra.gmra.mrb[0].mxu0 %vm266_vm0, %v1127_v5  ;;  %v1140_v5 = vld [vmem:[%s1646_s2 + $0x58] sm:$0xff]  }
  0x24   : > { %315 = vmatprep.mubr.bf16.mxu0 %v1224_v0  ;;  %p1147_p0 = pneg %p1146_p13 }
  0x25   : > { %455 = vperm.xlu1 %1120, %v379_v17  }
  0x26   : > { %450 = vperm.xlu0 %1119, %v378_v18   ;;  %p1154_p5 = pnand %p1153_p3, %p1147_p0 }
  0x29   : > { %465 = vperm.xlu1 %1120, %v381_v19  }
  0x2a   : > { %460 = vperm.xlu0 %1119, %v380_v20  }
  0x2b   : > { %1020 = vmatmul.mubr.msk.bf16.gmra.mrb[4].mxu0 %vm266_vm0, %v1128_v6  ;;  %v1141_v6 = vld [vmem:[%s1646_s2 + $0x60] sm:$0xff]  }
  0x2c   : > { %700 = vmatprep.mubr.bf16.mxu0 %v1224_v0 }
  0x2d   : > { %475 = vperm.xlu1 %1120, %v383_v21  }
  0x2e   : > { %470 = vperm.xlu0 %1119, %v382_v22  }
  0x31   : > { %485 = vperm.xlu1 %1120, %v385_v23  }
  0x32   : > { %480 = vperm.xlu0 %1119, %v384_v24  }
  0x35   : > { %495 = vperm.xlu1 %1120, %v387_v25  }
  0x36   : > { %490 = vperm.xlu0 %1119, %v386_v26  }
  0x39   : > { %505 = vperm.xlu1 %1120, %v389_v27  }
  0x3a   : > { %500 = vperm.xlu0 %1119, %v388_v28  }
  0x3d   : > { %515 = vperm.xlu1 %1120, %v391_v29  }
  0x3e   : > { %510 = vperm.xlu0 %1119, %v390_v30  }
  0x41   : > { %525 = vperm.xlu1 %1120, %v393_v31  }
  0x42   : > { %520 = vperm.xlu0 %1119, %v392_v32  }
  0x45   : > { %535 = vperm.xlu1 %1120, %v395_v33  }
  0x46   : > { %530 = vperm.xlu0 %1119, %v394_v34  }
  0x49   : > { %545 = vperm.xlu1 %1120, %v397_v35  }
  0x4a   : > { %540 = vperm.xlu0 %1119, %v396_v36  }
  0x90   : > { %v411_v9 = vpop.permute.xlu1 %410  ;;  %v401_v10 = vpop.permute.xlu0 %400 }
  0x94   : > { %v416_v11 = vpop.permute.xlu1 %415  ;;  %v406_v12 = vpop.permute.xlu0 %405 }
  0x98   : > { %v1490_v13 = vpop.permute.xlu1 %425  ;;  %v1492_v14 = vpop.permute.xlu0 %420 }
  0x9c   : > { %v1494_v15 = vpop.permute.xlu1 %435 }
  0x9d   : > { %v1496_v16 = vpop.permute.xlu0 %430 }
  0xa1   : > { %v1500_v17 = vpop.permute.xlu0 %440 }
  0xa5   : > { %v1504_v19 = vpop.permute.xlu0 %450 }
  0xa9   : > { %v461_v21 = vpop.permute.xlu0 %460 }
  0xf6   : > { %v307_v37 = vpop.f32.mrb[0].mxu0 }
  0xf7   : > { %v309_v38 = vpop.f32.mrb[1].mxu0  ;;  %v326_v40 = vmax.f32 %v307_v37, 0.0 }
  0xf8   : > { %v311_v39 = vpop.f32.mrb[2].mxu0  ;;  %v327_v43 = vmax.f32 %v309_v38, 0.0 }
  0xf9   : > { %v328_v41 = vmax.f32 %v311_v39, 0.0  ;;  %v313_v42 = vpop.f32.mrb[3].mxu0  ;;  %v471_v39 = vpop.permute.xlu0 %470 }
  0xfa   : > { %v329_v44 = vmax.f32 %v313_v42, 0.0 }
  0xfb   : > { %v364_v45 = vpack.c.bf16 %v328_v41, %v326_v40 }
  0xfc   : > { %v365_v46 = vpack.c.bf16 %v329_v44, %v327_v43 }
  0xfe   : > { %v317_v47 = vpop.f32.mrb[4].mxu0  ;;  %668 = vmatprep.subr.bf16.mxu0 %v365_v46  ;;  %1055 = vmatprep.subr.bf16.mxu1 %v365_v46 }
  0xff   : > { %v319_v48 = vpop.f32.mrb[5].mxu0  ;;  %669 = vmatpush1.bf16.msra.mxu0 %v364_v45  ;;  %1057 = vmatpush1.bf16.msra.mxu1 %v364_v45  ;;  %v330_v50 = vmax.f32 %v317_v47, 0.0 }
 0x100   : > { %v321_v49 = vpop.f32.mrb[6].mxu0  ;;  %v331_v53 = vmax.f32 %v319_v48, 0.0 }
 0x101   : > { %v332_v51 = vmax.f32 %v321_v49, 0.0  ;;  %v323_v52 = vpop.f32.mrb[7].mxu0 }
 0x102   : > { %v333_v54 = vmax.f32 %v323_v52, 0.0 }
 0x103   : > { %v366_v55 = vpack.c.bf16 %v332_v51, %v330_v50 }
 0x104   : > { %v367_v56 = vpack.c.bf16 %v333_v54, %v331_v53 }
 0x106   : > { %670 = vmatprep.subr.bf16.mxu0 %v367_v56  ;;  %1056 = vmatprep.subr.bf16.mxu1 %v367_v56 }
 0x107   : > { %671 = vmatpush1.bf16.msra.mxu0 %v366_v55  ;;  %1058 = vmatpush1.bf16.msra.mxu1 %v366_v55 }
 0x10a   : > { %1036 = vmatmul.mubr.msk.bf16.vlgmr.msra.gmra.mrb[8].mxu0 %vm266_vm0, %v1129_v57  ;;  %1042 = vmatmul.mubr.msk.bf16.vlgmr.msra.gmra.mrb[0].mxu1 %vm266_vm0, %v1130_v58  ;;  %v481_v57 = vpop.permute.xlu0 %480 }
 0x10b   : > { %710 = vmatprep.mubr.bf16.mxu0 %v1224_v0  ;;  %770 = vmatprep.mubr.bf16.mxu1 %v1224_v0 }
 0x112   : > { %1037 = vmatmul.mubr.msk.bf16.gmra.mrb[12].mxu0 %vm266_vm0, %v1131_v59  ;;  %1043 = vmatmul.mubr.msk.bf16.gmra.mrb[4].mxu1 %vm266_vm0, %v1132_v60 }
 0x113   : > { %720 = vmatprep.mubr.bf16.mxu0 %v1224_v0  ;;  %780 = vmatprep.mubr.bf16.mxu1 %v1224_v0 }
 0x11a   : > { %1038 = vmatmul.mubr.msk.bf16.gmra.mrb[16].mxu0 %vm266_vm0, %v1133_v61  ;;  %1044 = vmatmul.mubr.msk.bf16.gmra.mrb[8].mxu1 %vm266_vm0, %v1134_v62 }
 0x11b   : > { %730 = vmatprep.mubr.bf16.mxu0 %v1224_v0  ;;  %790 = vmatprep.mubr.bf16.mxu1 %v1224_v0 }
 0x122   : > { %1039 = vmatmul.mubr.msk.bf16.gmra.mrb[20].mxu0 %vm266_vm0, %v1135_v63  ;;  %1045 = vmatmul.mubr.msk.bf16.gmra.mrb[12].mxu1 %vm266_vm0, %v1136_v1 }
 0x123   : > { %740 = vmatprep.mubr.bf16.mxu0 %v1224_v0  ;;  %800 = vmatprep.mubr.bf16.mxu1 %v1224_v0 }
 0x12a   : > { %1040 = vmatmul.mubr.msk.bf16.gmra.mrb[24].mxu0 %vm266_vm0, %v1137_v2  ;;  %1046 = vmatmul.mubr.msk.bf16.gmra.mrb[16].mxu1 %vm266_vm0, %v1138_v3 }
 0x12b   : > { %750 = vmatprep.mubr.bf16.mxu0 %v1224_v0  ;;  %810 = vmatprep.mubr.bf16.mxu1 %v1224_v0 }
 0x132   : > { %1041 = vmatmul.mubr.msk.bf16.gmra.mrb[28].mxu0 %vm266_vm0, %v1139_v4  ;;  %1047 = vmatmul.mubr.msk.bf16.gmra.mrb[20].mxu1 %vm266_vm0, %v1140_v5 }
 0x133   : > { %820 = vmatprep.mubr.bf16.mxu1 %v1224_v0 }
 0x13a   : > { %1048 = vmatmul.mubr.msk.bf16.gmra.mrb[24].mxu1 %vm266_vm0, %v1141_v6 }
 0x13b   : > { %830 = vmatprep.mubr.bf16.mxu1 %v1224_v0 }
 0x142   : > { %1049 = vmatmul.mubr.msk.bf16.gmra.mrb[28].mxu1 %vm266_vm0, %v1142_v7 }
 0x143   : > { %840 = vmatprep.mubr.bf16.mxu1 %v1224_v0  ;;  %v1498_v0 = vpop.permute.xlu1 %445 }
 0x147   : > { %v1502_v18 = vpop.permute.xlu1 %455 }
 0x14a   : > { %1050 = vmatmul.mubr.msk.bf16.gmra.mrb[32].mxu1 %vm266_vm0, %v1143_v8 }
 0x14b   : > { %v466_v20 = vpop.permute.xlu1 %465 }
 0x14f   : > { %v476_v38 = vpop.permute.xlu1 %475 }
 0x153   : > { %v486_v56 = vpop.permute.xlu1 %485 }
 0x1dd   : > { %v762_v22 = vpop.f32.mrb[0].mxu1  ;;  %v702_v23 = vpop.f32.mrb[8].mxu0 }
 0x1de   : > { %v763_v24 = vadd.f32 %v762_v22, %v461_v21  ;;  %v764_v25 = vpop.f32.mrb[1].mxu1  ;;  %v703_v26 = vadd.f32 %v702_v23, %v401_v10  ;;  %v704_v27 = vpop.f32.mrb[9].mxu0 }
 0x1df   : > { %v765_v28 = vadd.f32 %v764_v25, %v461_v21  ;;  %v766_v29 = vpop.f32.mrb[2].mxu1  ;;  %v705_v30 = vadd.f32 %v704_v27, %v401_v10  ;;  %v706_v31 = vpop.f32.mrb[10].mxu0 }
 0x1e0   : > { %875 = vst [vmem:[%s1509_s8 + $0xc0] sm:$0xff] %v763_v24  ;;  %v767_v32 = vadd.f32 %v766_v29, %v466_v20  ;;  %v768_v33 = vpop.f32.mrb[3].mxu1  ;;  %851 = vst [vmem:[%s1509_s8] sm:$0xff] %v703_v26  ;;  %v707_v34 = vadd.f32 %v706_v31, %v406_v12  ;;  %v708_v35 = vpop.f32.mrb[11].mxu0 }
 0x1e1   : > { %876 = vst [vmem:[%s1509_s8 + $0xc8] sm:$0xff] %v765_v28  ;;  %v769_v36 = vadd.f32 %v768_v33, %v466_v20  ;;  %852 = vst [vmem:[%s1509_s8 + $0x8] sm:$0xff] %v705_v30  ;;  %v709_v37 = vadd.f32 %v708_v35, %v406_v12  ;;  %v491_v12 = vpop.permute.xlu0 %490 }
 0x1e2   : > { %877 = vst [vmem:[%s1509_s8 + $0xd0] sm:$0xff] %v767_v32  ;;  %853 = vst [vmem:[%s1509_s8 + $0x10] sm:$0xff] %v707_v34 }
 0x1e3   : > { %878 = vst [vmem:[%s1509_s8 + $0xd8] sm:$0xff] %v769_v36  ;;  %854 = vst [vmem:[%s1509_s8 + $0x18] sm:$0xff] %v709_v37 }
 0x1e5   : > { %v712_v40 = vpop.f32.mrb[12].mxu0  ;;  %v772_v41 = vpop.f32.mrb[4].mxu1 }
 0x1e6   : > { %v713_v42 = vadd.f32 %v712_v40, %v411_v9  ;;  %v773_v43 = vadd.f32 %v772_v41, %v471_v39  ;;  %v714_v44 = vpop.f32.mrb[13].mxu0  ;;  %v774_v45 = vpop.f32.mrb[5].mxu1 }
 0x1e7   : > { %v715_v46 = vadd.f32 %v714_v44, %v411_v9  ;;  %v775_v47 = vadd.f32 %v774_v45, %v471_v39  ;;  %v716_v48 = vpop.f32.mrb[14].mxu0  ;;  %v776_v49 = vpop.f32.mrb[6].mxu1 }
 0x1e8   : > { %855 = vst [vmem:[%s1509_s8 + $0x20] sm:$0xff] %v713_v42  ;;  %879 = vst [vmem:[%s1509_s8 + $0xe0] sm:$0xff] %v773_v43  ;;  %v717_v50 = vadd.f32 %v716_v48, %v416_v11  ;;  %v777_v51 = vadd.f32 %v776_v49, %v476_v38  ;;  %v718_v52 = vpop.f32.mrb[15].mxu0  ;;  %v778_v53 = vpop.f32.mrb[7].mxu1 }
 0x1e9   : > { %856 = vst [vmem:[%s1509_s8 + $0x28] sm:$0xff] %v715_v46  ;;  %880 = vst [vmem:[%s1509_s8 + $0xe8] sm:$0xff] %v775_v47  ;;  %v719_v54 = vadd.f32 %v718_v52, %v416_v11  ;;  %v779_v55 = vadd.f32 %v778_v53, %v476_v38  ;;  %v496_v11 = vpop.permute.xlu1 %495  ;;  %v501_v34 = vpop.permute.xlu0 %500 }
 0x1ea   : > { %857 = vst [vmem:[%s1509_s8 + $0x30] sm:$0xff] %v717_v50  ;;  %881 = vst [vmem:[%s1509_s8 + $0xf0] sm:$0xff] %v777_v51 }
 0x1eb   : > { %858 = vst [vmem:[%s1509_s8 + $0x38] sm:$0xff] %v719_v54  ;;  %882 = vst [vmem:[%s1509_s8 + $0xf8] sm:$0xff] %v779_v55 }
 0x1ed   : > { %v722_v58 = vpop.f32.mrb[16].mxu0  ;;  %v782_v59 = vpop.f32.mrb[8].mxu1 }
 0x1ee   : > { %v723_v60 = vadd.f32 %v722_v58, %v1492_v14  ;;  %v783_v61 = vadd.f32 %v782_v59, %v481_v57  ;;  %v724_v62 = vpop.f32.mrb[17].mxu0  ;;  %v784_v63 = vpop.f32.mrb[9].mxu1 }
 0x1ef   : > { %v725_v1 = vadd.f32 %v724_v62, %v1492_v14  ;;  %v785_v2 = vadd.f32 %v784_v63, %v481_v57  ;;  %v726_v3 = vpop.f32.mrb[18].mxu0  ;;  %v786_v4 = vpop.f32.mrb[10].mxu1 }
 0x1f0   : > { %859 = vst [vmem:[%s1509_s8 + $0x40] sm:$0xff] %v723_v60  ;;  %883 = vst [vmem:[%s1509_s8 + $0x100] sm:$0xff] %v783_v61  ;;  %v727_v5 = vadd.f32 %v726_v3, %v1490_v13  ;;  %v787_v6 = vadd.f32 %v786_v4, %v486_v56  ;;  %v728_v7 = vpop.f32.mrb[19].mxu0  ;;  %v788_v8 = vpop.f32.mrb[11].mxu1 }
 0x1f1   : > { %860 = vst [vmem:[%s1509_s8 + $0x48] sm:$0xff] %v725_v1  ;;  %884 = vst [vmem:[%s1509_s8 + $0x108] sm:$0xff] %v785_v2  ;;  %v729_v9 = vadd.f32 %v728_v7, %v1490_v13  ;;  %v789_v10 = vadd.f32 %v788_v8, %v486_v56  ;;  %v511_v50 = vpop.permute.xlu0 %510 }
 0x1f2   : > { %861 = vst [vmem:[%s1509_s8 + $0x50] sm:$0xff] %v727_v5  ;;  %885 = vst [vmem:[%s1509_s8 + $0x110] sm:$0xff] %v787_v6 }
 0x1f3   : > { %862 = vst [vmem:[%s1509_s8 + $0x58] sm:$0xff] %v729_v9  ;;  %886 = vst [vmem:[%s1509_s8 + $0x118] sm:$0xff] %v789_v10 }
 0x1f5   : > { %v732_v14 = vpop.f32.mrb[20].mxu0  ;;  %v792_v20 = vpop.f32.mrb[12].mxu1 }
 0x1f6   : > { %v733_v21 = vadd.f32 %v732_v14, %v1496_v16  ;;  %v793_v22 = vadd.f32 %v792_v20, %v491_v12  ;;  %v734_v23 = vpop.f32.mrb[21].mxu0  ;;  %v794_v24 = vpop.f32.mrb[13].mxu1 }
 0x1f7   : > { %v735_v13 = vadd.f32 %v734_v23, %v1496_v16  ;;  %v795_v25 = vadd.f32 %v794_v24, %v491_v12  ;;  %v736_v26 = vpop.f32.mrb[22].mxu0  ;;  %v796_v27 = vpop.f32.mrb[14].mxu1 }
 0x1f8   : > { %863 = vst [vmem:[%s1509_s8 + $0x60] sm:$0xff] %v733_v21  ;;  %887 = vst [vmem:[%s1509_s8 + $0x120] sm:$0xff] %v793_v22  ;;  %v737_v28 = vadd.f32 %v736_v26, %v1494_v15  ;;  %v797_v29 = vadd.f32 %v796_v27, %v496_v11  ;;  %v738_v30 = vpop.f32.mrb[23].mxu0  ;;  %v798_v31 = vpop.f32.mrb[15].mxu1 }
 0x1f9   : > { %864 = vst [vmem:[%s1509_s8 + $0x68] sm:$0xff] %v735_v13  ;;  %888 = vst [vmem:[%s1509_s8 + $0x128] sm:$0xff] %v795_v25  ;;  %v739_v32 = vadd.f32 %v738_v30, %v1494_v15  ;;  %v799_v33 = vadd.f32 %v798_v31, %v496_v11  ;;  %v506_v16 = vpop.permute.xlu1 %505 }
 0x1fa   : > { %865 = vst [vmem:[%s1509_s8 + $0x70] sm:$0xff] %v737_v28  ;;  %889 = vst [vmem:[%s1509_s8 + $0x130] sm:$0xff] %v797_v29 }
 0x1fb   : > { %866 = vst [vmem:[%s1509_s8 + $0x78] sm:$0xff] %v739_v32  ;;  %890 = vst [vmem:[%s1509_s8 + $0x138] sm:$0xff] %v799_v33 }
 0x1fd   : > { %v742_v35 = vpop.f32.mrb[24].mxu0  ;;  %v802_v36 = vpop.f32.mrb[16].mxu1 }
 0x1fe   : > { %v743_v37 = vadd.f32 %v742_v35, %v1500_v17  ;;  %v803_v38 = vadd.f32 %v802_v36, %v501_v34  ;;  %v744_v39 = vpop.f32.mrb[25].mxu0  ;;  %v804_v40 = vpop.f32.mrb[17].mxu1 }
 0x1ff   : > { %v745_v15 = vadd.f32 %v744_v39, %v1500_v17  ;;  %v805_v41 = vadd.f32 %v804_v40, %v501_v34  ;;  %v746_v42 = vpop.f32.mrb[26].mxu0  ;;  %v806_v43 = vpop.f32.mrb[18].mxu1 }
 0x200   : > { %867 = vst [vmem:[%s1509_s8 + $0x80] sm:$0xff] %v743_v37  ;;  %891 = vst [vmem:[%s1509_s8 + $0x140] sm:$0xff] %v803_v38  ;;  %v747_v44 = vadd.f32 %v746_v42, %v1498_v0  ;;  %v807_v45 = vadd.f32 %v806_v43, %v506_v16  ;;  %v748_v46 = vpop.f32.mrb[27].mxu0  ;;  %v808_v47 = vpop.f32.mrb[19].mxu1 }
 0x201   : > { %868 = vst [vmem:[%s1509_s8 + $0x88] sm:$0xff] %v745_v15  ;;  %892 = vst [vmem:[%s1509_s8 + $0x148] sm:$0xff] %v805_v41  ;;  %v749_v48 = vadd.f32 %v748_v46, %v1498_v0  ;;  %v809_v49 = vadd.f32 %v808_v47, %v506_v16  ;;  %v516_v17 = vpop.permute.xlu1 %515 }
 0x202   : > { %869 = vst [vmem:[%s1509_s8 + $0x90] sm:$0xff] %v747_v44  ;;  %893 = vst [vmem:[%s1509_s8 + $0x150] sm:$0xff] %v807_v45 }
 0x203   : > { %870 = vst [vmem:[%s1509_s8 + $0x98] sm:$0xff] %v749_v48  ;;  %894 = vst [vmem:[%s1509_s8 + $0x158] sm:$0xff] %v809_v49 }
 0x205   : > { %v752_v51 = vpop.f32.mrb[28].mxu0  ;;  %v812_v52 = vpop.f32.mrb[20].mxu1 }
 0x206   : > { %v753_v53 = vadd.f32 %v752_v51, %v1504_v19  ;;  %v813_v54 = vadd.f32 %v812_v52, %v511_v50  ;;  %v754_v55 = vpop.f32.mrb[29].mxu0  ;;  %v814_v56 = vpop.f32.mrb[21].mxu1 }
 0x207   : > { %v755_v0 = vadd.f32 %v754_v55, %v1504_v19  ;;  %v815_v57 = vadd.f32 %v814_v56, %v511_v50  ;;  %v756_v58 = vpop.f32.mrb[30].mxu0  ;;  %v816_v59 = vpop.f32.mrb[22].mxu1 }
 0x208   : > { %871 = vst [vmem:[%s1509_s8 + $0xa0] sm:$0xff] %v753_v53  ;;  %895 = vst [vmem:[%s1509_s8 + $0x160] sm:$0xff] %v813_v54  ;;  %v757_v60 = vadd.f32 %v756_v58, %v1502_v18  ;;  %v817_v61 = vadd.f32 %v816_v59, %v516_v17  ;;  %v758_v62 = vpop.f32.mrb[31].mxu0  ;;  %v818_v63 = vpop.f32.mrb[23].mxu1 }
 0x209   : > { %872 = vst [vmem:[%s1509_s8 + $0xa8] sm:$0xff] %v755_v0  ;;  %896 = vst [vmem:[%s1509_s8 + $0x168] sm:$0xff] %v815_v57  ;;  %v759_v1 = vadd.f32 %v758_v62, %v1502_v18  ;;  %v819_v2 = vadd.f32 %v818_v63, %v516_v17  ;;  %v521_v19 = vpop.permute.xlu0 %520  ;;  %v526_v6 = vpop.permute.xlu1 %525 }
 0x20a   : > { %873 = vst [vmem:[%s1509_s8 + $0xb0] sm:$0xff] %v757_v60  ;;  %897 = vst [vmem:[%s1509_s8 + $0x170] sm:$0xff] %v817_v61 }
 0x20b   : > { %874 = vst [vmem:[%s1509_s8 + $0xb8] sm:$0xff] %v759_v1  ;;  %898 = vst [vmem:[%s1509_s8 + $0x178] sm:$0xff] %v819_v2 }
 0x20d   : > { %v822_v3 = vpop.f32.mrb[24].mxu1  ;;  %v531_v11 = vpop.permute.xlu0 %530 }
 0x20e   : > { %v823_v4 = vadd.f32 %v822_v3, %v521_v19  ;;  %v824_v5 = vpop.f32.mrb[25].mxu1  ;;  %v536_v21 = vpop.permute.xlu1 %535 }
 0x20f   : > { %v825_v7 = vadd.f32 %v824_v5, %v521_v19  ;;  %v826_v8 = vpop.f32.mrb[26].mxu1 }
 0x210   : > { %899 = vst [vmem:[%s1509_s8 + $0x180] sm:$0xff] %v823_v4  ;;  %v827_v9 = vadd.f32 %v826_v8, %v526_v6  ;;  %v828_v18 = vpop.f32.mrb[27].mxu1 }
 0x211   : > { %900 = vst [vmem:[%s1509_s8 + $0x188] sm:$0xff] %v825_v7  ;;  %v829_v10 = vadd.f32 %v828_v18, %v526_v6  ;;  %v541_v26 = vpop.permute.xlu0 %540 }
 0x212   : > { %901 = vst [vmem:[%s1509_s8 + $0x190] sm:$0xff] %v827_v9  ;;  %v546_v30 = vpop.permute.xlu1 %545 }
 0x213   : > { %902 = vst [vmem:[%s1509_s8 + $0x198] sm:$0xff] %v829_v10 }
 0x215   : > { %v832_v12 = vpop.f32.mrb[28].mxu1 }
 0x216   : > { %v833_v14 = vadd.f32 %v832_v12, %v531_v11  ;;  %v834_v20 = vpop.f32.mrb[29].mxu1 }
 0x217   : > { %v835_v22 = vadd.f32 %v834_v20, %v531_v11  ;;  %v836_v23 = vpop.f32.mrb[30].mxu1 }
 0x218   : > { %903 = vst [vmem:[%s1509_s8 + $0x1a0] sm:$0xff] %v833_v14  ;;  %v837_v24 = vadd.f32 %v836_v23, %v536_v21  ;;  %v838_v13 = vpop.f32.mrb[31].mxu1 }
 0x219   : > { %904 = vst [vmem:[%s1509_s8 + $0x1a8] sm:$0xff] %v835_v22  ;;  %v839_v25 = vadd.f32 %v838_v13, %v536_v21 }
 0x21a   : > { %905 = vst [vmem:[%s1509_s8 + $0x1b0] sm:$0xff] %v837_v24 }
 0x21b   : > { %906 = vst [vmem:[%s1509_s8 + $0x1b8] sm:$0xff] %v839_v25 }
 0x21d   : > { %v842_v27 = vpop.f32.mrb[32].mxu1 }
 0x21e   : > { %v843_v28 = vadd.f32 %v842_v27, %v541_v26  ;;  %v844_v29 = vpop.f32.mrb[33].mxu1 }
 0x21f   : > { %v845_v31 = vadd.f32 %v844_v29, %v541_v26  ;;  %v846_v32 = vpop.f32.mrb[34].mxu1 }
 0x220   : > { %907 = vst [vmem:[%s1509_s8 + $0x1c0] sm:$0xff] %v843_v28  ;;  %v847_v33 = vadd.f32 %v846_v32, %v546_v30  ;;  %v848_v16 = vpop.f32.mrb[35].mxu1 }
 0x221   : > { %908 = vst [vmem:[%s1509_s8 + $0x1c8] sm:$0xff] %v845_v31  ;;  %v849_v34 = vadd.f32 %v848_v16, %v546_v30 }
 0x222   : > { %909 = vst [vmem:[%s1509_s8 + $0x1d0] sm:$0xff] %v847_v33 }
 0x223   : > { %910 = vst [vmem:[%s1509_s8 + $0x1d8] sm:$0xff] %v849_v34 }
 0x224   : > { %1157 = shalt.err (!%p1154_p5)
}
 0x225   : > { %s1158_s26 = scalar_lea.hbm %s1589_s13, 7680  ;;  %s1162_s5 = scalar_lea.hbm %s1648_s4, 15360 }
 0x226   : > { %p1159_p6 = scmp.ne.s32.totalorder %s1589_s13, %s1158_s26  ;;  %p1163_p10 = scmp.lt.u32.totalorder %s1589_s13, %s1648_s4 }
 0x227   : > { %p1164_p11 = scmp.lt.u32.totalorder %s1162_s5, %s1158_s26  ;;  %p1166_p13 = scmp.lt.u32.totalorder %s1158_s26, %s1589_s13 }
 0x228   : > { %p1160_p7 = pnand %p1159_p6, %p1293_p4 }
 0x229   : > { %p1165_p12 = por %p1164_p11, %p1163_p10 }
 0x22a   : > { %p1161_p9 = pneg %p1160_p7 }
 0x22b   : > { %p1167_p0 = por %p1166_p13, %p1165_p12 }
 0x22d   : > { %p1168_p1 = pnand %p1167_p0, %p1161_p9 }
 0x22f   : > { %1171 = shalt.err (!%p1168_p1)
}
 0x230   : > { %s1226_s8 = smov 256   ;;  %s1227_s9 = smov 16  }
 0x231   : > { %1061 = dma.vmem_to_hbm [thread:$0]  (%p1293_p4), %s1591_s10, 7680, %s1589_s13, %s1598_s18, %s1226_s8, %s1226_s8, %s1227_s9  }
 0x232 PF: > { %p1067_p2 = scmp.ge.s32.totalorder %s1222_s20, 2  ;;  %s942_s11 = sand.u32 1, %s1202_s15  }
 0x233   : > { %s943_s12 = scalar_lea.sflag [#allocation3], %s942_s11 }
 0x234   : > { %p1064_p3 = pnand %p1067_p2, %p1300_p8 }
 0x236   : > { %1197 = dma.done.wait (!%p1064_p3), %s943_s12, 7680  }
 0x237   : > { %1199 = vsyncadd (!%p1064_p3), %s943_s12, 4294959616  ;;  %s17_s20 = sadd.s32 1, %s1222_s20   ;;  %s1651_s15 = smov %s1206_s16 }
 0x238   : > { %p14_p5 = scmp.ge.s32.totalorder %s17_s20, 4   ;;  %s1652_s16 = smov %s1210_s17 }
 0x239   : > { %s1653_s17 = smov %s1306_s28  ;;  %s1654_s18 = smov %s1218_s19 }
 0x23a   : > { %s1655_s19 = smov %s1657_s23  ;;  %16 = sbr.rel (!%p14_p5) target bundleno = 4 (0x4), region = 71 }
 0x241   :  { %948 = vsyncpa [#allocation3], 1 }
 0x242   :  { %950 = vsyncpa [#allocation3 + $0x1], 1 }

</bundles_post_ra>
